<compile_context>
chip_gen: v7x
topology: tpu7x:2x2x1
jax: 0.10.0
libtpu: 0.0.40
codegen_flags: <defaults>
</compile_context>

<pallas_src>
import functools

import jax
import jax.numpy as jnp
from jax.experimental import pallas as pl
from jax.experimental.pallas import tpu as pltpu


def _round_up(n, m):
    return ((n + m - 1) // m) * m


def _auto_block_b(B, max_block_b=512):
    """Pick the batch tile at trace time (B is a static Python int)."""
    if B > 2 * max_block_b:
        return max_block_b                         # big batch: full tiles, grid >= 2
    if B >= 256:
        # Two near-equal tiles so v7x megacore uses both TensorCores; tile is a
        # sublane multiple (8) so the ragged last tile stays layout-legal.
        return _round_up(pl.cdiv(B, 2), 8)
    return B                                       # small batch: one exact-size tile


def _mlp_kernel(x_ref, w1_ref, b1_ref, w2_ref, b2_ref, w3_ref, b3_ref,
                wq_ref, bq_ref, out_ref):
    cd = w1_ref.dtype                    # matmul operand dtype (bf16 fast path)
    x = x_ref[...].astype(cd)            # in-kernel cast: no extra XLA pass
    # fc1 + ReLU  (K=16 underfills MXU depth but is <3% of total FLOPs)
    # TODO(synk): if profiling shows the MXU saturated, move fc1 onto the VPU.
    h = jnp.dot(x, w1_ref[...], preferred_element_type=jnp.float32)
    h = jnp.maximum(h + b1_ref[...], 0.0)
    # fc2 + ReLU
    h = jnp.dot(h.astype(cd), w2_ref[...], preferred_element_type=jnp.float32)
    h = jnp.maximum(h + b2_ref[...], 0.0)
    # fc3 + ReLU
    h = jnp.dot(h.astype(cd), w3_ref[...], preferred_element_type=jnp.float32)
    h = jnp.maximum(h + b3_ref[...], 0.0)
    # q head: compact num_actions-wide output (tiny masked writeback)
    q = jnp.dot(h.astype(cd), wq_ref[...], preferred_element_type=jnp.float32)
    out_ref[...] = (q + bq_ref[...]).astype(out_ref.dtype)


@functools.partial(jax.jit, static_argnames=("block_b",))
def residual_advantage_forward(x, params, *, block_b=None):
    """x: (B, obs+goal) float32.

    params: weights stored transposed from PyTorch, i.e. W has shape
    (in_features, out_features); biases are (1, out_features) rows.  Pass the
    output of prepare_params() so no per-call casts are needed.
    Returns (B, num_actions) float32 Q-values.
    """
    B, d_in = x.shape
    w1, b1 = params["w1"], params["b1"]
    w2, b2 = params["w2"], params["b2"]
    w3, b3 = params["w3"], params["b3"]
    wq, bq = params["wq"], params["bq"]
    num_actions = wq.shape[1]

    if block_b is None:
        block_b = _auto_block_b(B)
    grid = (pl.cdiv(B, block_b),)

    # Constant index_map: weights/biases map to the same block every step, so
    # they stay resident in VMEM across the batch grid (no re-DMA).
    full = lambda a: pl.BlockSpec(a.shape, lambda i: (0,) * a.ndim)

    return pl.pallas_call(
        _mlp_kernel,
        out_shape=jax.ShapeDtypeStruct((B, num_actions), jnp.float32),
        grid=grid,
        in_specs=[
            pl.BlockSpec((block_b, d_in), lambda i: (i, 0)),   # x batch tile
            full(w1), full(b1),
            full(w2), full(b2),
            full(w3), full(b3),
            full(wq), full(bq),
        ],
        out_specs=pl.BlockSpec((block_b, num_actions), lambda i: (i, 0)),
        compiler_params=pltpu.CompilerParams(
            dimension_semantics=("parallel",)),    # megacore splits batch tiles
    )(x, w1, b1, w2, b2, w3, b3, wq, bq)


def prepare_params(params, compute_dtype=jnp.bfloat16):
    """One-time cast, outside the per-call wrapper: weights -> compute_dtype
    (bf16 is the MXU fast path on every TPU generation), biases stay f32 so
    they add into the f32 accumulator."""
    return {k: v.astype(compute_dtype if k.startswith("w") else jnp.float32)
            for k, v in params.items()}


def init_params(key, obs, goal, num_actions, hidden=256):
    """Parameter init mirroring the module: fc1-fc3 PyTorch-default uniform,
    q_out zero weights/bias.  Weights stored transposed: (in, out)."""
    d_in = obs + goal
    keys = jax.random.split(key, 6)

    def linear(kw, kb, fan_in, fan_out):
        bound = 1.0 / jnp.sqrt(jnp.float32(fan_in))
        w = jax.random.uniform(kw, (fan_in, fan_out), jnp.float32, -bound, bound)
        b = jax.random.uniform(kb, (1, fan_out), jnp.float32, -bound, bound)
        return w, b

    w1, b1 = linear(keys[0], keys[1], d_in, hidden)
    w2, b2 = linear(keys[2], keys[3], hidden, hidden)
    w3, b3 = linear(keys[4], keys[5], hidden, hidden)
    wq = jnp.zeros((hidden, num_actions), jnp.float32)
    bq = jnp.zeros((1, num_actions), jnp.float32)
    return dict(w1=w1, b1=b1, w2=w2, b2=b2, w3=w3, b3=b3, wq=wq, bq=bq)


def reference_forward(x, params, compute_dtype=jnp.float32):
    """Pure-JAX reference; optionally mirrors the kernel's bf16 operand casts."""
    cd = compute_dtype

    def lin(h, w, b):
        return jnp.dot(h.astype(cd), w.astype(cd),
                       preferred_element_type=jnp.float32) + b.astype(jnp.float32)

    h = jnp.maximum(lin(x, params["w1"], params["b1"]), 0.0)
    h = jnp.maximum(lin(h, params["w2"], params["b2"]), 0.0)
    h = jnp.maximum(lin(h, params["w3"], params["b3"]), 0.0)
    return lin(h, params["wq"], params["bq"])


if __name__ == "__main__":
    # env_params: obs=10, goal=6, num_actions=8 ; hidden fixed at 256 by module
    OBS, GOAL, NUM_ACTIONS = 10, 6, 8
    HIDDEN = 256
    BATCH_SMALL = 8        # RL act-selection style batch (single exact tile)
    BATCH_RAGGED = 300     # exercises the 2-tile grid + ragged last tile

    key = jax.random.PRNGKey(0)
    k_params, k_x1, k_x2, k_wq = jax.random.split(key, 4)

    params = init_params(k_params, OBS, GOAL, NUM_ACTIONS, hidden=HIDDEN)
    x_small = jax.random.normal(k_x1, (BATCH_SMALL, OBS + GOAL), jnp.float32)
    x_big = jax.random.normal(k_x2, (BATCH_RAGGED, OBS + GOAL), jnp.float32)

    # Params prepared ONCE (f32 exact path and bf16 fast path).
    params_f32 = prepare_params(params, jnp.float32)
    params_bf16 = prepare_params(params, jnp.bfloat16)

    # 1) Module semantics: zero-initialized q head -> exactly zero Q-values.
    q0 = jax.block_until_ready(residual_advantage_forward(x_small, params_f32))
    assert q0.shape == (BATCH_SMALL, NUM_ACTIONS)
    assert bool(jnp.all(q0 == 0.0))
    assert jnp.allclose(q0, reference_forward(x_small, params),
                        atol=5e-3, rtol=5e-2)

    # 2) Non-zero q head, f32 path, small batch.
    bound = 1.0 / jnp.sqrt(jnp.float32(HIDDEN))
    params_nz = dict(params)
    params_nz["wq"] = jax.random.uniform(
        k_wq, (HIDDEN, NUM_ACTIONS), jnp.float32, -bound, bound)
    params_nz_f32 = prepare_params(params_nz, jnp.float32)
    params_nz_bf16 = prepare_params(params_nz, jnp.bfloat16)

    q_f32 = jax.block_until_ready(
        residual_advantage_forward(x_small, params_nz_f32))
    assert jnp.allclose(q_f32, reference_forward(x_small, params_nz),
                        atol=5e-3, rtol=5e-2)

    # 3) Default fast path: bf16 operands, f32 accumulation.
    q_bf16 = jax.block_until_ready(
        residual_advantage_forward(x_small, params_nz_bf16))
    assert q_bf16.shape == (BATCH_SMALL, NUM_ACTIONS)
    assert jnp.allclose(q_bf16,
                        reference_forward(x_small, params_nz, jnp.bfloat16),
                        atol=1e-2, rtol=5e-2)
    assert jnp.allclose(q_bf16, reference_forward(x_small, params_nz),
                        atol=1e-2, rtol=1e-1)

    # 4) Ragged multi-tile grid (B=300 -> 2 "parallel" tiles of 152 rows,
    #    last tile partial / masked writeback), f32 and bf16 paths.
    q_big_f32 = jax.block_until_ready(
        residual_advantage_forward(x_big, params_nz_f32))
    assert q_big_f32.shape == (BATCH_RAGGED, NUM_ACTIONS)
    assert jnp.allclose(q_big_f32, reference_forward(x_big, params_nz),
                        atol=5e-3, rtol=5e-2)

    q_big_bf16 = jax.block_until_ready(
        residual_advantage_forward(x_big, params_nz_bf16))
    assert jnp.allclose(q_big_bf16,
                        reference_forward(x_big, params_nz, jnp.bfloat16),
                        atol=1e-2, rtol=5e-2)

    print("KERNEL_OK")
</pallas_src>

<mosaic_0001>
module attributes {stable_mosaic.version = 11 : i64} {
  func.func @_mlp_kernel(%arg0: i32, %arg1: memref<8x16xf32, #tpu.memory_space<vmem>>, %arg2: memref<16x256xf32, #tpu.memory_space<vmem>>, %arg3: memref<1x256xf32, #tpu.memory_space<vmem>>, %arg4: memref<256x256xf32, #tpu.memory_space<vmem>>, %arg5: memref<1x256xf32, #tpu.memory_space<vmem>>, %arg6: memref<256x256xf32, #tpu.memory_space<vmem>>, %arg7: memref<1x256xf32, #tpu.memory_space<vmem>>, %arg8: memref<256x8xf32, #tpu.memory_space<vmem>>, %arg9: memref<1x8xf32, #tpu.memory_space<vmem>>, %arg10: memref<8x8xf32, #tpu.memory_space<vmem>>) attributes {dimension_semantics = [#tpu.dimension_semantics<parallel>], iteration_bounds = array<i64: 1>, scalar_prefetch = 0 : i64, scratch_operands = 0 : i64, tpu.core_type = #tpu.core_type<tc>, window_params = [{transform_indices = @transform_0, window_bounds = array<i64: 8, 16>}, {pipeline_mode = #tpu.pipeline_mode<synchronous>, transform_indices = @transform_1, window_bounds = array<i64: 16, 256>}, {pipeline_mode = #tpu.pipeline_mode<synchronous>, transform_indices = @transform_2, window_bounds = array<i64: 1, 256>}, {pipeline_mode = #tpu.pipeline_mode<synchronous>, transform_indices = @transform_3, window_bounds = array<i64: 256, 256>}, {pipeline_mode = #tpu.pipeline_mode<synchronous>, transform_indices = @transform_4, window_bounds = array<i64: 1, 256>}, {pipeline_mode = #tpu.pipeline_mode<synchronous>, transform_indices = @transform_5, window_bounds = array<i64: 256, 256>}, {pipeline_mode = #tpu.pipeline_mode<synchronous>, transform_indices = @transform_6, window_bounds = array<i64: 1, 256>}, {pipeline_mode = #tpu.pipeline_mode<synchronous>, transform_indices = @transform_7, window_bounds = array<i64: 256, 8>}, {pipeline_mode = #tpu.pipeline_mode<synchronous>, transform_indices = @transform_8, window_bounds = array<i64: 1, 8>}, {transform_indices = @transform_9, window_bounds = array<i64: 8, 8>}]} {
    %c0 = arith.constant 0 : index
    %c0_0 = arith.constant 0 : index
    %0 = vector.load %arg1[%c0, %c0_0] : memref<8x16xf32, #tpu.memory_space<vmem>>, vector<8x16xf32>
    %c0_1 = arith.constant 0 : index
    %c0_2 = arith.constant 0 : index
    %1 = vector.load %arg2[%c0_1, %c0_2] : memref<16x256xf32, #tpu.memory_space<vmem>>, vector<16x256xf32>
    %cst = arith.constant dense<0.000000e+00> : vector<8x256xf32>
    %2 = tpu.matmul %0, %1, %cst {dimension_numbers = #tpu.dot_dimension_numbers<[1], [0], [0], [1], [0, 0, 1, 1], [], []>} : vector<8x16xf32>, vector<16x256xf32>, vector<8x256xf32> -> vector<8x256xf32>
    %c0_3 = arith.constant 0 : index
    %c0_4 = arith.constant 0 : index
    %3 = vector.load %arg3[%c0_3, %c0_4] : memref<1x256xf32, #tpu.memory_space<vmem>>, vector<1x256xf32>
    %4 = vector.broadcast %3 : vector<1x256xf32> to vector<8x256xf32>
    %5 = arith.addf %2, %4 : vector<8x256xf32>
    %cst_5 = arith.constant 0.000000e+00 : f32
    %6 = vector.broadcast %cst_5 : f32 to vector<8x256xf32>
    %7 = arith.maximumf %5, %6 : vector<8x256xf32>
    %c0_6 = arith.constant 0 : index
    %c0_7 = arith.constant 0 : index
    %8 = vector.load %arg4[%c0_6, %c0_7] : memref<256x256xf32, #tpu.memory_space<vmem>>, vector<256x256xf32>
    %cst_8 = arith.constant dense<0.000000e+00> : vector<8x256xf32>
    %9 = tpu.matmul %7, %8, %cst_8 {dimension_numbers = #tpu.dot_dimension_numbers<[1], [0], [0], [1], [0, 0, 1, 1], [], []>} : vector<8x256xf32>, vector<256x256xf32>, vector<8x256xf32> -> vector<8x256xf32>
    %c0_9 = arith.constant 0 : index
    %c0_10 = arith.constant 0 : index
    %10 = vector.load %arg5[%c0_9, %c0_10] : memref<1x256xf32, #tpu.memory_space<vmem>>, vector<1x256xf32>
    %11 = vector.broadcast %10 : vector<1x256xf32> to vector<8x256xf32>
    %12 = arith.addf %9, %11 : vector<8x256xf32>
    %cst_11 = arith.constant 0.000000e+00 : f32
    %13 = vector.broadcast %cst_11 : f32 to vector<8x256xf32>
    %14 = arith.maximumf %12, %13 : vector<8x256xf32>
    %c0_12 = arith.constant 0 : index
    %c0_13 = arith.constant 0 : index
    %15 = vector.load %arg6[%c0_12, %c0_13] : memref<256x256xf32, #tpu.memory_space<vmem>>, vector<256x256xf32>
    %cst_14 = arith.constant dense<0.000000e+00> : vector<8x256xf32>
    %16 = tpu.matmul %14, %15, %cst_14 {dimension_numbers = #tpu.dot_dimension_numbers<[1], [0], [0], [1], [0, 0, 1, 1], [], []>} : vector<8x256xf32>, vector<256x256xf32>, vector<8x256xf32> -> vector<8x256xf32>
    %c0_15 = arith.constant 0 : index
    %c0_16 = arith.constant 0 : index
    %17 = vector.load %arg7[%c0_15, %c0_16] : memref<1x256xf32, #tpu.memory_space<vmem>>, vector<1x256xf32>
    %18 = vector.broadcast %17 : vector<1x256xf32> to vector<8x256xf32>
    %19 = arith.addf %16, %18 : vector<8x256xf32>
    %cst_17 = arith.constant 0.000000e+00 : f32
    %20 = vector.broadcast %cst_17 : f32 to vector<8x256xf32>
    %21 = arith.maximumf %19, %20 : vector<8x256xf32>
    %c0_18 = arith.constant 0 : index
    %c0_19 = arith.constant 0 : index
    %22 = vector.load %arg8[%c0_18, %c0_19] : memref<256x8xf32, #tpu.memory_space<vmem>>, vector<256x8xf32>
    %cst_20 = arith.constant dense<0.000000e+00> : vector<8x8xf32>
    %23 = tpu.matmul %21, %22, %cst_20 {dimension_numbers = #tpu.dot_dimension_numbers<[1], [0], [0], [1], [0, 0, 1, 1], [], []>} : vector<8x256xf32>, vector<256x8xf32>, vector<8x8xf32> -> vector<8x8xf32>
    %c0_21 = arith.constant 0 : index
    %c0_22 = arith.constant 0 : index
    %24 = vector.load %arg9[%c0_21, %c0_22] : memref<1x8xf32, #tpu.memory_space<vmem>>, vector<1x8xf32>
    %25 = vector.broadcast %24 : vector<1x8xf32> to vector<8x8xf32>
    %26 = arith.addf %23, %25 : vector<8x8xf32>
    %c0_23 = arith.constant 0 : index
    %c0_24 = arith.constant 0 : index
    %27 = vector.load %arg10[%c0_23, %c0_24] : memref<8x8xf32, #tpu.memory_space<vmem>>, vector<8x8xf32>
    tpu.vector_store %arg10[%c0_23, %c0_24], %26 {strides = array<i32>} : memref<8x8xf32, #tpu.memory_space<vmem>>, vector<8x8xf32>,
    return
  }
  func.func @transform_0(%arg0: i32) -> (i32, i32) {
    %c0_i32 = arith.constant 0 : i32
    %c0_i32_0 = arith.constant 0 : i32
    return %arg0, %c0_i32 : i32, i32
  }
  func.func @transform_1(%arg0: i32) -> (i32, i32) {
    %c0_i32 = arith.constant 0 : i32
    %c0_i32_0 = arith.constant 0 : i32
    %c0_i32_1 = arith.constant 0 : i32
    return %c0_i32, %c0_i32_0 : i32, i32
  }
  func.func @transform_2(%arg0: i32) -> (i32, i32) {
    %c0_i32 = arith.constant 0 : i32
    %c0_i32_0 = arith.constant 0 : i32
    %c0_i32_1 = arith.constant 0 : i32
    return %c0_i32, %c0_i32_0 : i32, i32
  }
  func.func @transform_3(%arg0: i32) -> (i32, i32) {
    %c0_i32 = arith.constant 0 : i32
    %c0_i32_0 = arith.constant 0 : i32
    %c0_i32_1 = arith.constant 0 : i32
    return %c0_i32, %c0_i32_0 : i32, i32
  }
  func.func @transform_4(%arg0: i32) -> (i32, i32) {
    %c0_i32 = arith.constant 0 : i32
    %c0_i32_0 = arith.constant 0 : i32
    %c0_i32_1 = arith.constant 0 : i32
    return %c0_i32, %c0_i32_0 : i32, i32
  }
  func.func @transform_5(%arg0: i32) -> (i32, i32) {
    %c0_i32 = arith.constant 0 : i32
    %c0_i32_0 = arith.constant 0 : i32
    %c0_i32_1 = arith.constant 0 : i32
    return %c0_i32, %c0_i32_0 : i32, i32
  }
  func.func @transform_6(%arg0: i32) -> (i32, i32) {
    %c0_i32 = arith.constant 0 : i32
    %c0_i32_0 = arith.constant 0 : i32
    %c0_i32_1 = arith.constant 0 : i32
    return %c0_i32, %c0_i32_0 : i32, i32
  }
  func.func @transform_7(%arg0: i32) -> (i32, i32) {
    %c0_i32 = arith.constant 0 : i32
    %c0_i32_0 = arith.constant 0 : i32
    %c0_i32_1 = arith.constant 0 : i32
    return %c0_i32, %c0_i32_0 : i32, i32
  }
  func.func @transform_8(%arg0: i32) -> (i32, i32) {
    %c0_i32 = arith.constant 0 : i32
    %c0_i32_0 = arith.constant 0 : i32
    %c0_i32_1 = arith.constant 0 : i32
    return %c0_i32, %c0_i32_0 : i32, i32
  }
  func.func @transform_9(%arg0: i32) -> (i32, i32) {
    %c0_i32 = arith.constant 0 : i32
    %c0_i32_0 = arith.constant 0 : i32
    return %arg0, %c0_i32 : i32, i32
  }
}

</mosaic_0001>

<bundles_post_ra>
// kernel: residual_advantage_forward.1
= control target key start
LH: loop header
LB: loop body
LE: loop exit
PB: predicated region body
PF: predicated region fallthrough
CT: control target
= control target key end

     0   :  { %14 = vsyncpa [#allocation3], 0  ;;  %s1084_s0 = inlined_call_operand.vmem [shape: f32[8,16], index: 0, kind: input, shape index: {}]   ;;  %s1085_s1 = inlined_call_operand.vmem [shape: f32[16,256], index: 1, kind: input, shape index: {}]   ;;  %s1086_s2 = inlined_call_operand.vmem [shape: f32[1,256], index: 2, kind: input, shape index: {}]   ;;  %s1087_s3 = inlined_call_operand.hbm [shape: f32[256,256], index: 3, kind: input, shape index: {}]   ;;  %s1088_s4 = inlined_call_operand.vmem [shape: f32[1,256], index: 4, kind: input, shape index: {}]   ;;  %s1089_s5 = inlined_call_operand.hbm [shape: f32[256,256], index: 5, kind: input, shape index: {}]   ;;  %s1090_s6 = inlined_call_operand.vmem [shape: f32[1,256], index: 6, kind: input, shape index: {}]   ;;  %s1091_s7 = inlined_call_operand.vmem [shape: f32[256,8], index: 7, kind: input, shape index: {}]   ;;  %s1092_s8 = inlined_call_operand.vmem [shape: f32[1,8], index: 8, kind: input, shape index: {}]   ;;  %s1093_s9 = inlined_call_operand.hbm [shape: f32[8,8], index: 9, kind: output, shape index: {}]  }
   0x1   :  { %15 = vsyncpa [#allocation6], 0 }
   0x2   :  { %16 = vsyncpa [#allocation4], 0  ;;  %s859_s30 = smov [#allocation2]   ;;  %s787_s13 = scalar_lea.hbm %s1087_s3, 8192 }
   0x3   :  { %s28_s10 = sshll.u32 %s859_s30, 4  ;;  %p788_p0 = scmp.ne.s32.totalorder %s1087_s3, %s787_s13  ;;  %s29_s10 = int_to_ptr.vmem [resolvable:$true] %s28_s10 }
   0x4   :  { %p791_p1 = scmp.lt.u32.totalorder %s787_s13, %s1087_s3 }
   0x6   :  { %p793_p2 = pnand %p791_p1, %p788_p0 }
   0x8   :  { %796 = shalt.err (!%p793_p2)
}
   0x9   :  { %s797_s18 = scalar_lea.vmem %s29_s10, 8192  ;;  %p802_p4 = scmp.lt.s32.totalorder %s29_s10, %s29_s10 }
   0xa   :  { %p798_p3 = scmp.ne.s32.totalorder %s29_s10, %s797_s18  ;;  %p803_p5 = scmp.lt.s32.totalorder %s797_s18, %s797_s18 }
   0xc   :  { %p804_p6 = por %p803_p5, %p802_p4 }
   0xe   :  { %p805_p7 = pnand %p804_p6, %p798_p3 }
  0x10   :  { %808 = shalt.err (!%p805_p7)
}
  0x11   :  { %s860_s19 = smov 256   ;;  %s861_s20 = smov 16  }
  0x12   :  { %34 = dma.hbm_to_vmem [thread:$0]  %s1087_s3, 8192, %s29_s10, [#allocation3], %s860_s19, %s860_s19, %s861_s20  }
  0x13   :  { %s862_s23 = smov [#allocation5]   ;;  %s809_s27 = scalar_lea.hbm %s1089_s5, 8192 }
  0x14   :  { %s42_s24 = sshll.u32 %s862_s23, 4  ;;  %p810_p8 = scmp.ne.s32.totalorder %s1089_s5, %s809_s27  ;;  %s43_s24 = int_to_ptr.vmem [resolvable:$true] %s42_s24 }
  0x15   :  { %p813_p9 = scmp.lt.u32.totalorder %s809_s27, %s1089_s5 }
  0x17   :  { %p815_p10 = pnand %p813_p9, %p810_p8 }
  0x19   :  { %818 = shalt.err (!%p815_p10)
}
  0x1a   :  { %s819_s12 = scalar_lea.vmem %s43_s24, 8192  ;;  %p824_p12 = scmp.lt.s32.totalorder %s43_s24, %s43_s24 }
  0x1b   :  { %p820_p11 = scmp.ne.s32.totalorder %s43_s24, %s819_s12  ;;  %p825_p13 = scmp.lt.s32.totalorder %s819_s12, %s819_s12 }
  0x1d   :  { %p826_p0 = por %p825_p13, %p824_p12 }
  0x1f   :  { %p827_p1 = pnand %p826_p0, %p820_p11 }
  0x21   :  { %830 = shalt.err (!%p827_p1)
}
  0x22   :  { %48 = dma.hbm_to_vmem [thread:$0]  %s1089_s5, 8192, %s43_s24, [#allocation6], %s860_s19, %s860_s19, %s861_s20  }
  0x23   :  { %853 = dma.done.wait [#allocation3], 8192  }
  0x24   :  { %854 = vsyncadd [#allocation3], 4294959104 }
  0x25   :  { %855 = dma.done.wait [#allocation6], 8192  }
  0x26   :  { %856 = vsyncadd [#allocation6], 4294959104  ;;  %v863_v0 = vmov 0.0   ;;  %v63_v1 = vld [vmem:[%s1085_s1 + $0x8] sm:$0xff]  ;;  %v65_v2 = vld [vmem:[%s1085_s1 + $0x18] sm:$0xff]  ;;  %vm78_vm0 = vcmask 130048  }
  0x27   :  { %146 = vmatprep.mubr.f32.mxu0 %v863_v0  ;;  %v62_v3 = vld [vmem:[%s1085_s1] sm:$0xff]  ;;  %v617_v4 = vpack.c.bf16 %v65_v2, %v63_v1  ;;  %v64_v5 = vld [vmem:[%s1085_s1 + $0x10] sm:$0xff]  ;;  %v156_v6 = vld [vmem:[#allocation2 + $0x8] sm:$0xff]  ;;  %s864_s15 = smov [#allocation7]   ;;  %vm562_vm1 = vcmask 64512  }
  0x28   :  { %v619_v7 = vpack.c.bf16 %v64_v5, %v62_v3  ;;  %v61_v8 = vld [vmem:[%s1084_s0] sm:$0xff]  ;;  %v158_v9 = vld [vmem:[#allocation2 + $0x18] sm:$0xff]  ;;  %v157_v11 = vld [vmem:[#allocation2 + $0x10] sm:$0xff] }
  0x29   :  { %v155_v10 = vld [vmem:[#allocation2] sm:$0xff]  ;;  %618 = vmatprep.subr.bf16.mxu0 %v617_v4  ;;  %v621_v12 = vpack.c.bf16 %v158_v9, %v156_v6  ;;  %v160_v14 = vld [vmem:[#allocation2 + $0x28] sm:$0xff]  ;;  %v162_v15 = vld [vmem:[#allocation2 + $0x38] sm:$0xff] }
  0x2a   :  { %v623_v13 = vpack.c.bf16 %v157_v11, %v155_v10  ;;  %v159_v16 = vld [vmem:[#allocation2 + $0x20] sm:$0xff]  ;;  %620 = vmatpush1.bf16.msra.mxu0 %v619_v7  ;;  %v625_v17 = vpack.c.bf16 %v162_v15, %v160_v14  ;;  %v161_v18 = vld [vmem:[#allocation2 + $0x30] sm:$0xff]  ;;  %v164_v19 = vld [vmem:[#allocation2 + $0x48] sm:$0xff] }
  0x2b   :  { %v166_v20 = vld [vmem:[#allocation2 + $0x58] sm:$0xff]  ;;  %622 = vmatprep.subr.bf16.mxu1 %v621_v12  ;;  %v627_v21 = vpack.c.bf16 %v161_v18, %v159_v16  ;;  %v163_v23 = vld [vmem:[#allocation2 + $0x40] sm:$0xff]  ;;  %v165_v24 = vld [vmem:[#allocation2 + $0x50] sm:$0xff] }
  0x2c   :  { %624 = vmatpush1.bf16.msra.mxu1 %v623_v13  ;;  %v629_v22 = vpack.c.bf16 %v166_v20, %v164_v19  ;;  %v168_v25 = vld [vmem:[#allocation2 + $0x68] sm:$0xff]  ;;  %v170_v26 = vld [vmem:[#allocation2 + $0x78] sm:$0xff]  ;;  %v631_v27 = vpack.c.bf16 %v165_v24, %v163_v23  ;;  %v167_v29 = vld [vmem:[#allocation2 + $0x60] sm:$0xff] }
  0x2d   :  { %580 = vmatmul.mubr.msk.f32.vlgmr.msra.gmra.mrb[0].mxu0 %vm78_vm0, %v61_v8  ;;  %626 = vmatprep.subr.bf16.mxu1 %v625_v17  ;;  %v633_v28 = vpack.c.bf16 %v170_v26, %v168_v25  ;;  %v169_v30 = vld [vmem:[#allocation2 + $0x70] sm:$0xff]  ;;  %v172_v31 = vld [vmem:[#allocation2 + $0x88] sm:$0xff]  ;;  %v174_v32 = vld [vmem:[#allocation2 + $0x98] sm:$0xff] }
  0x2e   :  { %v635_v33 = vpack.c.bf16 %v169_v30, %v167_v29  ;;  %v637_v34 = vpack.c.bf16 %v174_v32, %v172_v31  ;;  %v171_v35 = vld [vmem:[#allocation2 + $0x80] sm:$0xff]  ;;  %v173_v36 = vld [vmem:[#allocation2 + $0x90] sm:$0xff]  ;;  %v176_v37 = vld [vmem:[#allocation2 + $0xa8] sm:$0xff] }
  0x2f   :  { %v178_v38 = vld [vmem:[#allocation2 + $0xb8] sm:$0xff]  ;;  %v639_v39 = vpack.c.bf16 %v173_v36, %v171_v35  ;;  %v175_v41 = vld [vmem:[#allocation2 + $0xa0] sm:$0xff]  ;;  %v177_v42 = vld [vmem:[#allocation2 + $0xb0] sm:$0xff] }
  0x30   :  { %628 = vmatpush1.bf16.msra.mxu1 %v627_v21  ;;  %v641_v40 = vpack.c.bf16 %v178_v38, %v176_v37  ;;  %v180_v43 = vld [vmem:[#allocation2 + $0xc8] sm:$0xff]  ;;  %v182_v44 = vld [vmem:[#allocation2 + $0xd8] sm:$0xff]  ;;  %v643_v45 = vpack.c.bf16 %v177_v42, %v175_v41  ;;  %v179_v47 = vld [vmem:[#allocation2 + $0xc0] sm:$0xff] }
  0x31   :  { %630 = vmatprep.subr.bf16.mxu1 %v629_v22  ;;  %v645_v46 = vpack.c.bf16 %v182_v44, %v180_v43  ;;  %v181_v48 = vld [vmem:[#allocation2 + $0xd0] sm:$0xff]  ;;  %v184_v49 = vld [vmem:[#allocation2 + $0xe8] sm:$0xff]  ;;  %v186_v50 = vld [vmem:[#allocation2 + $0xf8] sm:$0xff] }
  0x32   :  { %v647_v51 = vpack.c.bf16 %v181_v48, %v179_v47  ;;  %v649_v52 = vpack.c.bf16 %v186_v50, %v184_v49  ;;  %v183_v53 = vld [vmem:[#allocation2 + $0xe0] sm:$0xff]  ;;  %v185_v54 = vld [vmem:[#allocation2 + $0xf0] sm:$0xff]  ;;  %v188_v55 = vld [vmem:[#allocation2 + $0x108] sm:$0xff] }
  0x33   :  { %v190_v56 = vld [vmem:[#allocation2 + $0x118] sm:$0xff]  ;;  %v651_v57 = vpack.c.bf16 %v185_v54, %v183_v53  ;;  %v187_v59 = vld [vmem:[#allocation2 + $0x100] sm:$0xff]  ;;  %v189_v60 = vld [vmem:[#allocation2 + $0x110] sm:$0xff] }
  0x34   :  { %632 = vmatpush1.bf16.msra.mxu1 %v631_v27  ;;  %v653_v58 = vpack.c.bf16 %v190_v56, %v188_v55  ;;  %v192_v61 = vld [vmem:[#allocation2 + $0x128] sm:$0xff]  ;;  %v194_v62 = vld [vmem:[#allocation2 + $0x138] sm:$0xff]  ;;  %v655_v63 = vpack.c.bf16 %v189_v60, %v187_v59  ;;  %v191_v1 = vld [vmem:[#allocation2 + $0x120] sm:$0xff] }
  0x35   :  { %634 = vmatprep.subr.bf16.mxu1 %v633_v28  ;;  %v657_v0 = vpack.c.bf16 %v194_v62, %v192_v61  ;;  %v193_v2 = vld [vmem:[#allocation2 + $0x130] sm:$0xff]  ;;  %v196_v3 = vld [vmem:[#allocation2 + $0x148] sm:$0xff]  ;;  %v198_v4 = vld [vmem:[#allocation2 + $0x158] sm:$0xff] }
  0x36   :  { %v659_v5 = vpack.c.bf16 %v193_v2, %v191_v1  ;;  %v661_v6 = vpack.c.bf16 %v198_v4, %v196_v3  ;;  %v195_v7 = vld [vmem:[#allocation2 + $0x140] sm:$0xff]  ;;  %v197_v8 = vld [vmem:[#allocation2 + $0x150] sm:$0xff]  ;;  %v200_v9 = vld [vmem:[#allocation2 + $0x168] sm:$0xff] }
  0x37   :  { %v202_v10 = vld [vmem:[#allocation2 + $0x178] sm:$0xff]  ;;  %v663_v11 = vpack.c.bf16 %v197_v8, %v195_v7  ;;  %v199_v13 = vld [vmem:[#allocation2 + $0x160] sm:$0xff]  ;;  %v201_v14 = vld [vmem:[#allocation2 + $0x170] sm:$0xff] }
  0x38   :  { %636 = vmatpush1.bf16.msra.mxu1 %v635_v33  ;;  %v665_v12 = vpack.c.bf16 %v202_v10, %v200_v9  ;;  %v204_v15 = vld [vmem:[#allocation2 + $0x188] sm:$0xff]  ;;  %v206_v16 = vld [vmem:[#allocation2 + $0x198] sm:$0xff]  ;;  %v667_v17 = vpack.c.bf16 %v201_v14, %v199_v13  ;;  %v203_v19 = vld [vmem:[#allocation2 + $0x180] sm:$0xff] }
  0x39   :  { %638 = vmatprep.subr.bf16.mxu1 %v637_v34  ;;  %v669_v18 = vpack.c.bf16 %v206_v16, %v204_v15  ;;  %v205_v20 = vld [vmem:[#allocation2 + $0x190] sm:$0xff]  ;;  %v208_v21 = vld [vmem:[#allocation2 + $0x1a8] sm:$0xff]  ;;  %v210_v22 = vld [vmem:[#allocation2 + $0x1b8] sm:$0xff] }
  0x3a   :  { %v671_v23 = vpack.c.bf16 %v205_v20, %v203_v19  ;;  %v673_v24 = vpack.c.bf16 %v210_v22, %v208_v21  ;;  %v207_v25 = vld [vmem:[#allocation2 + $0x1a0] sm:$0xff]  ;;  %v209_v26 = vld [vmem:[#allocation2 + $0x1b0] sm:$0xff]  ;;  %v212_v27 = vld [vmem:[#allocation2 + $0x1c8] sm:$0xff] }
  0x3b   :  { %v214_v28 = vld [vmem:[#allocation2 + $0x1d8] sm:$0xff]  ;;  %v675_v29 = vpack.c.bf16 %v209_v26, %v207_v25  ;;  %v211_v31 = vld [vmem:[#allocation2 + $0x1c0] sm:$0xff]  ;;  %v213_v32 = vld [vmem:[#allocation2 + $0x1d0] sm:$0xff] }
  0x3c   :  { %640 = vmatpush1.bf16.msra.mxu1 %v639_v39  ;;  %v677_v30 = vpack.c.bf16 %v214_v28, %v212_v27  ;;  %v679_v33 = vpack.c.bf16 %v213_v32, %v211_v31  ;;  %v216_v34 = vld [vmem:[#allocation2 + $0x1e8] sm:$0xff]  ;;  %v218_v35 = vld [vmem:[#allocation2 + $0x1f8] sm:$0xff]  ;;  %v215_v37 = vld [vmem:[#allocation2 + $0x1e0] sm:$0xff] }
  0x3d   :  { %642 = vmatprep.subr.bf16.mxu1 %v641_v40  ;;  %v681_v36 = vpack.c.bf16 %v218_v35, %v216_v34  ;;  %v217_v38 = vld [vmem:[#allocation2 + $0x1f0] sm:$0xff]  ;;  %v305_v40 = vld [vmem:[#allocation5 + $0x8] sm:$0xff]  ;;  %v307_v41 = vld [vmem:[#allocation5 + $0x18] sm:$0xff] }
  0x3e   :  { %v683_v39 = vpack.c.bf16 %v217_v38, %v215_v37  ;;  %v304_v42 = vld [vmem:[#allocation5] sm:$0xff]  ;;  %v685_v43 = vpack.c.bf16 %v307_v41, %v305_v40  ;;  %v306_v44 = vld [vmem:[#allocation5 + $0x10] sm:$0xff]  ;;  %v345_v35 = vld [vmem:[#allocation5 + $0x148] sm:$0xff] }
  0x3f   :  { %v687_v47 = vpack.c.bf16 %v306_v44, %v304_v42  ;;  %v308_v49 = vld [vmem:[#allocation5 + $0x20] sm:$0xff]  ;;  %v310_v50 = vld [vmem:[#allocation5 + $0x30] sm:$0xff]  ;;  %v349_v41 = vld [vmem:[#allocation5 + $0x168] sm:$0xff] }
  0x40   :  { %644 = vmatpush1.bf16.msra.mxu1 %v643_v45  ;;  %v309_v45 = vld [vmem:[#allocation5 + $0x28] sm:$0xff]  ;;  %686 = vmatprep.subr.bf16.mxu0 %v685_v43  ;;  %v691_v53 = vpack.c.bf16 %v310_v50, %v308_v49  ;;  %v312_v55 = vld [vmem:[#allocation5 + $0x40] sm:$0xff]  ;;  %v314_v56 = vld [vmem:[#allocation5 + $0x50] sm:$0xff] }
  0x41   :  { %646 = vmatprep.subr.bf16.mxu1 %v645_v46  ;;  %v311_v46 = vld [vmem:[#allocation5 + $0x38] sm:$0xff]  ;;  %688 = vmatpush1.bf16.msra.mxu0 %v687_v47  ;;  %v695_v59 = vpack.c.bf16 %v314_v56, %v312_v55  ;;  %v316_v61 = vld [vmem:[#allocation5 + $0x60] sm:$0xff]  ;;  %v318_v62 = vld [vmem:[#allocation5 + $0x70] sm:$0xff] }
  0x42   :  { %v689_v48 = vpack.c.bf16 %v311_v46, %v309_v45  ;;  %v699_v1 = vpack.c.bf16 %v318_v62, %v316_v61  ;;  %v320_v3 = vld [vmem:[#allocation5 + $0x80] sm:$0xff]  ;;  %v322_v4 = vld [vmem:[#allocation5 + $0x90] sm:$0xff]  ;;  %v351_v42 = vld [vmem:[#allocation5 + $0x178] sm:$0xff] }
  0x43   :  { %v703_v7 = vpack.c.bf16 %v322_v4, %v320_v3  ;;  %v324_v9 = vld [vmem:[#allocation5 + $0xa0] sm:$0xff]  ;;  %v326_v10 = vld [vmem:[#allocation5 + $0xb0] sm:$0xff]  ;;  %v729_v44 = vpack.c.bf16 %v351_v42, %v349_v41  ;;  %v353_v47 = vld [vmem:[#allocation5 + $0x188] sm:$0xff] }
  0x44   :  { %648 = vmatpush1.bf16.msra.mxu1 %v647_v51  ;;  %v313_v51 = vld [vmem:[#allocation5 + $0x48] sm:$0xff]  ;;  %690 = vmatprep.subr.bf16.mxu0 %v689_v48  ;;  %v707_v13 = vpack.c.bf16 %v326_v10, %v324_v9  ;;  %v328_v15 = vld [vmem:[#allocation5 + $0xc0] sm:$0xff]  ;;  %v330_v16 = vld [vmem:[#allocation5 + $0xd0] sm:$0xff] }
  0x45   :  { %650 = vmatprep.subr.bf16.mxu1 %v649_v52  ;;  %v315_v52 = vld [vmem:[#allocation5 + $0x58] sm:$0xff]  ;;  %692 = vmatpush1.bf16.msra.mxu0 %v691_v53  ;;  %v711_v19 = vpack.c.bf16 %v330_v16, %v328_v15  ;;  %v332_v21 = vld [vmem:[#allocation5 + $0xe0] sm:$0xff]  ;;  %v334_v22 = vld [vmem:[#allocation5 + $0xf0] sm:$0xff] }
  0x46   :  { %v693_v54 = vpack.c.bf16 %v315_v52, %v313_v51  ;;  %v715_v25 = vpack.c.bf16 %v334_v22, %v332_v21  ;;  %v336_v27 = vld [vmem:[#allocation5 + $0x100] sm:$0xff]  ;;  %v338_v28 = vld [vmem:[#allocation5 + $0x110] sm:$0xff]  ;;  %v355_v48 = vld [vmem:[#allocation5 + $0x198] sm:$0xff] }
  0x47   :  { %v719_v31 = vpack.c.bf16 %v338_v28, %v336_v27  ;;  %v342_v34 = vld [vmem:[#allocation5 + $0x130] sm:$0xff]  ;;  %v348_v45 = vld [vmem:[#allocation5 + $0x160] sm:$0xff]  ;;  %v733_v50 = vpack.c.bf16 %v355_v48, %v353_v47  ;;  %v357_v53 = vld [vmem:[#allocation5 + $0x1a8] sm:$0xff] }
  0x48   :  { %652 = vmatpush1.bf16.msra.mxu1 %v651_v57  ;;  %v317_v57 = vld [vmem:[#allocation5 + $0x68] sm:$0xff]  ;;  %694 = vmatprep.subr.bf16.mxu0 %v693_v54  ;;  %v346_v40 = vld [vmem:[#allocation5 + $0x150] sm:$0xff]  ;;  %v352_v51 = vld [vmem:[#allocation5 + $0x180] sm:$0xff] }
  0x49   :  { %654 = vmatprep.subr.bf16.mxu1 %v653_v58  ;;  %v319_v58 = vld [vmem:[#allocation5 + $0x78] sm:$0xff]  ;;  %696 = vmatpush1.bf16.msra.mxu0 %v695_v59  ;;  %v350_v46 = vld [vmem:[#allocation5 + $0x170] sm:$0xff]  ;;  %v361_v59 = vld [vmem:[#allocation5 + $0x1c8] sm:$0xff] }
  0x4a   :  { %v697_v60 = vpack.c.bf16 %v319_v58, %v317_v57  ;;  %v731_v49 = vpack.c.bf16 %v350_v46, %v348_v45  ;;  %v354_v52 = vld [vmem:[#allocation5 + $0x190] sm:$0xff]  ;;  %v359_v54 = vld [vmem:[#allocation5 + $0x1b8] sm:$0xff]  ;;  %v356_v57 = vld [vmem:[#allocation5 + $0x1a0] sm:$0xff] }
  0x4b   :  { %v735_v55 = vpack.c.bf16 %v354_v52, %v352_v51  ;;  %v737_v56 = vpack.c.bf16 %v359_v54, %v357_v53  ;;  %v358_v58 = vld [vmem:[#allocation5 + $0x1b0] sm:$0xff]  ;;  %v365_v15 = vld [vmem:[#allocation5 + $0x1e8] sm:$0xff]  ;;  %v367_v16 = vld [vmem:[#allocation5 + $0x1f8] sm:$0xff] }
  0x4c   :  { %656 = vmatpush1.bf16.msra.mxu1 %v655_v63  ;;  %v321_v63 = vld [vmem:[#allocation5 + $0x88] sm:$0xff]  ;;  %698 = vmatprep.subr.bf16.mxu0 %v697_v60  ;;  %v363_v60 = vld [vmem:[#allocation5 + $0x1d8] sm:$0xff]  ;;  %v739_v61 = vpack.c.bf16 %v358_v58, %v356_v57  ;;  %v469_v21 = vld [vmem:[%s1091_s7 + $0x80] sm:$0xff] }
  0x4d   :  { %658 = vmatprep.subr.bf16.mxu1 %v657_v0  ;;  %v323_v0 = vld [vmem:[#allocation5 + $0x98] sm:$0xff]  ;;  %700 = vmatpush1.bf16.msra.mxu0 %v699_v1  ;;  %v741_v62 = vpack.c.bf16 %v363_v60, %v361_v59  ;;  %v470_v22 = vld [vmem:[%s1091_s7 + $0x88] sm:$0xff]  ;;  %v459_v42 = vld [vmem:[%s1091_s7 + $0x30] sm:$0xff] }
  0x4e   :  { %v701_v2 = vpack.c.bf16 %v323_v0, %v321_v63  ;;  %v68_v63 = vlaneseq  ;;  %v472_v27 = vld [vmem:[%s1091_s7 + $0x98] sm:$0xff]  ;;  %v478_v45 = vld [vmem:[%s1091_s7 + $0xc8] sm:$0xff]  ;;  %v461_v48 = vld [vmem:[%s1091_s7 + $0x40] sm:$0xff] }
  0x4f   :  { %v480_v51 = vld [vmem:[%s1091_s7 + $0xd8] sm:$0xff]  ;;  %v463_v54 = vld [vmem:[%s1091_s7 + $0x50] sm:$0xff]  ;;  %v482_v57 = vld [vmem:[%s1091_s7 + $0xe8] sm:$0xff] }
  0x50   :  { %660 = vmatpush1.bf16.msra.mxu1 %v659_v5  ;;  %v325_v5 = vld [vmem:[#allocation5 + $0xa8] sm:$0xff]  ;;  %702 = vmatprep.subr.bf16.mxu0 %v701_v2  ;;  %v69_v0 = vshrl.u32 %v68_v63, 7  ;;  %v66_v2 = vld [vmem:[%s1086_s2] sm:$0x3] }
  0x51   :  { %662 = vmatprep.subr.bf16.mxu1 %v661_v6  ;;  %v327_v6 = vld [vmem:[#allocation5 + $0xb8] sm:$0xff]  ;;  %704 = vmatpush1.bf16.msra.mxu0 %v703_v7  ;;  %v219_v60 = vld [vmem:[%s1088_s4] sm:$0x3] }
  0x52   :  { %v705_v8 = vpack.c.bf16 %v327_v6, %v325_v5  ;;  %v954_v1 = vsub.s32 0, %v69_v0  ;;  %v959_v3 = vsub.s32 1, %v69_v0 }
  0x54   :  { %664 = vmatpush1.bf16.msra.mxu1 %v663_v11  ;;  %v329_v11 = vld [vmem:[#allocation5 + $0xc8] sm:$0xff]  ;;  %706 = vmatprep.subr.bf16.mxu0 %v705_v8  ;;  %v71_v4 = vrot.slane %v66_v2, %v954_v1  ;;  %v75_v5 = vrot.slane %v66_v2, %v959_v3 }
  0x55   :  { %666 = vmatprep.subr.bf16.mxu1 %v665_v12  ;;  %v331_v12 = vld [vmem:[#allocation5 + $0xd8] sm:$0xff]  ;;  %708 = vmatpush1.bf16.msra.mxu0 %v707_v13  ;;  %v362_v13 = vld [vmem:[#allocation5 + $0x1d0] sm:$0xff] }
  0x56   :  { %v709_v14 = vpack.c.bf16 %v331_v12, %v329_v11  ;;  %v360_v12 = vld [vmem:[#allocation5 + $0x1c0] sm:$0xff] }
  0x58   :  { %668 = vmatpush1.bf16.msra.mxu1 %v667_v17  ;;  %v333_v17 = vld [vmem:[#allocation5 + $0xe8] sm:$0xff]  ;;  %710 = vmatprep.subr.bf16.mxu0 %v709_v14  ;;  %v743_v14 = vpack.c.bf16 %v362_v13, %v360_v12  ;;  %v467_v13 = vld [vmem:[%s1091_s7 + $0x70] sm:$0xff] }
  0x59   :  { %670 = vmatprep.subr.bf16.mxu1 %v669_v18  ;;  %v335_v18 = vld [vmem:[#allocation5 + $0xf8] sm:$0xff]  ;;  %712 = vmatpush1.bf16.msra.mxu0 %v711_v19  ;;  %v366_v19 = vld [vmem:[#allocation5 + $0x1f0] sm:$0xff] }
  0x5a   :  { %v713_v20 = vpack.c.bf16 %v335_v18, %v333_v17  ;;  %v745_v17 = vpack.c.bf16 %v367_v16, %v365_v15  ;;  %v364_v18 = vld [vmem:[#allocation5 + $0x1e0] sm:$0xff] }
  0x5b   :  { %v368_v16 = vld [vmem:[%s1090_s6] sm:$0x3]  ;;  %s570_s6 = sshll.u32 %s864_s15, 4  ;;  %s571_s6 = int_to_ptr.vmem [resolvable:$true] %s570_s6 }
  0x5c   :  { %672 = vmatpush1.bf16.msra.mxu1 %v671_v23  ;;  %v337_v23 = vld [vmem:[#allocation5 + $0x108] sm:$0xff]  ;;  %714 = vmatprep.subr.bf16.mxu0 %v713_v20  ;;  %v747_v20 = vpack.c.bf16 %v366_v19, %v364_v18  ;;  %v377_v18 = vrot.slane %v368_v16, %v959_v3  ;;  %s831_s16 = scalar_lea.vmem %s571_s6, 128  ;;  %p836_p3 = scmp.lt.s32.totalorder %s571_s6, %s571_s6 }
  0x5d   :  { %674 = vmatprep.subr.bf16.mxu1 %v673_v24  ;;  %v339_v24 = vld [vmem:[#allocation5 + $0x118] sm:$0xff]  ;;  %716 = vmatpush1.bf16.msra.mxu0 %v715_v25  ;;  %v454_v25 = vld [vmem:[%s1091_s7 + $0x8] sm:$0xff]  ;;  %p832_p2 = scmp.ne.s32.totalorder %s571_s6, %s831_s16  ;;  %p837_p4 = scmp.lt.s32.totalorder %s831_s16, %s831_s16 }
  0x5e   :  { %v717_v26 = vpack.c.bf16 %v339_v24, %v337_v23  ;;  %v453_v23 = vld [vmem:[%s1091_s7] sm:$0xff]  ;;  %v749_v24 = vpack.c.bf16 %v470_v22, %v469_v21 }
  0x5f   :  { %v751_v28 = vpack.c.bf16 %v454_v25, %v453_v23  ;;  %p838_p5 = por %p837_p4, %p836_p3 }
  0x60   :  { %676 = vmatpush1.bf16.msra.mxu1 %v675_v29  ;;  %v341_v29 = vld [vmem:[#allocation5 + $0x128] sm:$0xff]  ;;  %718 = vmatprep.subr.bf16.mxu0 %v717_v26  ;;  %v471_v26 = vld [vmem:[%s1091_s7 + $0x90] sm:$0xff] }
  0x61   :  { %678 = vmatprep.subr.bf16.mxu1 %v677_v30  ;;  %v343_v30 = vld [vmem:[#allocation5 + $0x138] sm:$0xff]  ;;  %720 = vmatpush1.bf16.msra.mxu0 %v719_v31  ;;  %p839_p6 = pnand %p838_p5, %p832_p2 }
  0x62   :  { %v721_v32 = vpack.c.bf16 %v343_v30, %v341_v29  ;;  %v753_v29 = vpack.c.bf16 %v472_v27, %v471_v26  ;;  %v455_v30 = vld [vmem:[%s1091_s7 + $0x10] sm:$0xff]  ;;  %v456_v31 = vld [vmem:[%s1091_s7 + $0x18] sm:$0xff]  ;;  %v581_v26 = vld [vmem:[%s1092_s8] ss:$0 sm:$0xff] }
  0x64   :  { %680 = vmatpush1.bf16.msra.mxu1 %v679_v33  ;;  %v340_v33 = vld [vmem:[#allocation5 + $0x120] sm:$0xff]  ;;  %722 = vmatprep.subr.bf16.mxu0 %v721_v32 }
  0x65   :  { %682 = vmatprep.subr.bf16.mxu1 %v681_v36  ;;  %v347_v36 = vld [vmem:[#allocation5 + $0x158] sm:$0xff]  ;;  %v723_v37 = vpack.c.bf16 %v342_v34, %v340_v33  ;;  %v473_v32 = vld [vmem:[%s1091_s7 + $0xa0] sm:$0xff]  ;;  %v474_v33 = vld [vmem:[%s1091_s7 + $0xa8] sm:$0xff]  ;;  %v755_v34 = vpack.c.bf16 %v456_v31, %v455_v30 }
  0x66   :  { %v725_v38 = vpack.c.bf16 %v347_v36, %v345_v35  ;;  %v757_v35 = vpack.c.bf16 %v474_v33, %v473_v32  ;;  %v457_v36 = vld [vmem:[%s1091_s7 + $0x20] sm:$0xff] }
  0x67   :  { %724 = vmatpush1.bf16.msra.mxu0 %v723_v37  ;;  %v458_v37 = vld [vmem:[%s1091_s7 + $0x28] sm:$0xff] }
  0x68   :  { %684 = vmatpush1.bf16.msra.mxu1 %v683_v39  ;;  %v344_v39 = vld [vmem:[#allocation5 + $0x140] sm:$0xff]  ;;  %726 = vmatprep.subr.bf16.mxu0 %v725_v38  ;;  %v475_v38 = vld [vmem:[%s1091_s7 + $0xb0] sm:$0xff] }
  0x69   :  { %v727_v43 = vpack.c.bf16 %v346_v40, %v344_v39  ;;  %750 = vmatprep.subr.bf16.mxu1 %v749_v24  ;;  %v476_v39 = vld [vmem:[%s1091_s7 + $0xb8] sm:$0xff]  ;;  %v759_v40 = vpack.c.bf16 %v458_v37, %v457_v36 }
  0x6a   :  { %v761_v41 = vpack.c.bf16 %v476_v39, %v475_v38 }
  0x6b   :  { %728 = vmatpush1.bf16.msra.mxu0 %v727_v43  ;;  %v460_v43 = vld [vmem:[%s1091_s7 + $0x38] sm:$0xff] }
  0x6c   :  { %730 = vmatprep.subr.bf16.mxu0 %v729_v44  ;;  %v477_v44 = vld [vmem:[%s1091_s7 + $0xc0] sm:$0xff]  ;;  %v763_v46 = vpack.c.bf16 %v460_v43, %v459_v42 }
  0x6d   :  { %v765_v47 = vpack.c.bf16 %v478_v45, %v477_v44 }
  0x6f   :  { %732 = vmatpush1.bf16.msra.mxu0 %v731_v49  ;;  %v462_v49 = vld [vmem:[%s1091_s7 + $0x48] sm:$0xff] }
  0x70   :  { %734 = vmatprep.subr.bf16.mxu0 %v733_v50  ;;  %v479_v50 = vld [vmem:[%s1091_s7 + $0xd0] sm:$0xff]  ;;  %v767_v52 = vpack.c.bf16 %v462_v49, %v461_v48 }
  0x71   :  { %v769_v53 = vpack.c.bf16 %v480_v51, %v479_v50 }
  0x73   :  { %736 = vmatpush1.bf16.msra.mxu0 %v735_v55  ;;  %v464_v55 = vld [vmem:[%s1091_s7 + $0x58] sm:$0xff] }
  0x74   :  { %738 = vmatprep.subr.bf16.mxu0 %v737_v56  ;;  %v481_v56 = vld [vmem:[%s1091_s7 + $0xe0] sm:$0xff]  ;;  %v771_v58 = vpack.c.bf16 %v464_v55, %v463_v54 }
  0x75   :  { %v773_v59 = vpack.c.bf16 %v482_v57, %v481_v56 }
  0x77   :  { %740 = vmatpush1.bf16.msra.mxu0 %v739_v61  ;;  %v224_v61 = vrot.slane %v219_v60, %v954_v1 }
  0x78   :  { %742 = vmatprep.subr.bf16.mxu0 %v741_v62  ;;  %v228_v62 = vrot.slane %v219_v60, %v959_v3 }
  0x7b   :  { %744 = vmatpush1.bf16.msra.mxu0 %v743_v14  ;;  %v468_v14 = vld [vmem:[%s1091_s7 + $0x78] sm:$0xff] }
  0x7c   :  { %746 = vmatprep.subr.bf16.mxu0 %v745_v17  ;;  %v779_v15 = vpack.c.bf16 %v468_v14, %v467_v13  ;;  %v373_v17 = vrot.slane %v368_v16, %v954_v1 }
  0x7f   :  { %748 = vmatpush1.bf16.msra.mxu0 %v747_v20 }
 0x100   :  { %v148_v6 = vpop.f32.mrb[0].mxu0 }
 0x101   :  { %v149_v7 = vadd.f32 %v148_v6, %v71_v4  ;;  %v150_v8 = vpop.f32.mrb[1].mxu0 }
 0x102   :  { %v151_v9 = vadd.f32 %v150_v8, %v75_v5  ;;  %v466_v8 = vld [vmem:[%s1091_s7 + $0x68] sm:$0xff] }
 0x103   :  { %v153_v11 = vmax.f32 %v149_v7, 0.0  ;;  %v465_v7 = vld [vmem:[%s1091_s7 + $0x60] sm:$0xff] }
 0x104   :  { %v154_v10 = vmax.f32 %v151_v9, 0.0  ;;  %v775_v9 = vpack.c.bf16 %v466_v8, %v465_v7 }
 0x106   :  { %295 = vmatprep.mubr.f32.mxu1 %v154_v10  ;;  %v483_v10 = vld [vmem:[%s1091_s7 + $0xf0] sm:$0xff] }
 0x107   :  { %296 = vmatmul.mubr.f32.vlgmr.msra.gmra.mrb[0].mxu1 %v153_v11  ;;  %v484_v11 = vld [vmem:[%s1091_s7 + $0xf8] sm:$0xff] }
 0x108   :  { %752 = vmatpush3.bf16.msra.mxu1 %v751_v28  ;;  %v777_v12 = vpack.c.bf16 %v484_v11, %v483_v10 }
 0x109   :  { %754 = vmatprep.subr.bf16.mxu1 %v753_v29 }
 0x10c   :  { %756 = vmatpush3.bf16.msra.mxu1 %v755_v34 }
 0x10d   :  { %758 = vmatprep.subr.bf16.mxu1 %v757_v35 }
 0x110   :  { %760 = vmatpush3.bf16.msra.mxu1 %v759_v40 }
 0x111   :  { %762 = vmatprep.subr.bf16.mxu1 %v761_v41 }
 0x114   :  { %764 = vmatpush3.bf16.msra.mxu1 %v763_v46 }
 0x115   :  { %766 = vmatprep.subr.bf16.mxu1 %v765_v47 }
 0x118   :  { %768 = vmatpush3.bf16.msra.mxu1 %v767_v52 }
 0x119   :  { %770 = vmatprep.subr.bf16.mxu1 %v769_v53 }
 0x11c   :  { %772 = vmatpush3.bf16.msra.mxu1 %v771_v58 }
 0x11d   :  { %774 = vmatprep.subr.bf16.mxu1 %v773_v59 }
 0x120   :  { %776 = vmatpush3.bf16.msra.mxu1 %v775_v9 }
 0x121   :  { %778 = vmatprep.subr.bf16.mxu1 %v777_v12 }
 0x124   :  { %780 = vmatpush3.bf16.msra.mxu1 %v779_v15 }
 0x1da   :  { %v297_v63 = vpop.f32.mrb[0].mxu1 }
 0x1db   :  { %v298_v0 = vadd.f32 %v297_v63, %v224_v61  ;;  %v299_v2 = vpop.f32.mrb[1].mxu1 }
 0x1dc   :  { %v300_v4 = vadd.f32 %v299_v2, %v228_v62 }
 0x1dd   :  { %v302_v6 = vmax.f32 %v298_v0, 0.0 }
 0x1de   :  { %v303_v5 = vmax.f32 %v300_v4, 0.0 }
 0x1e0   :  { %444 = vmatprep.mubr.f32.mxu0 %v303_v5 }
 0x1e1   :  { %445 = vmatmul.mubr.f32.vlgmr.msra.gmra.mrb[2].mxu0 %v302_v6 }
 0x2b4   :  { %v446_v19 = vpop.f32.mrb[2].mxu0 }
 0x2b5   :  { %v447_v20 = vadd.f32 %v446_v19, %v373_v17  ;;  %v448_v21 = vpop.f32.mrb[3].mxu0 }
 0x2b6   :  { %v449_v22 = vadd.f32 %v448_v21, %v377_v18 }
 0x2b7   :  { %v451_v24 = vmax.f32 %v447_v20, 0.0 }
 0x2b8   :  { %v452_v23 = vmax.f32 %v449_v22, 0.0 }
 0x2ba   :  { %556 = vmatprep.mubr.f32.mxu1 %v452_v23 }
 0x2bb   :  { %557 = vmatmul.mubr.f32.vlgmr.msra.gmra.mrb[2].mxu1 %v451_v24 }
 0x38e   :  { %v614_v25 = vpop.f32.mrb[2].mxu1 }
 0x38f   :  { %v615_v27 = vpop.f32.mrb[3].mxu1 }
 0x390   :  { %v616_v28 = vadd.f32 %v615_v27, %v614_v25 }
 0x392   :  { %v559_v1 = vadd.f32 %v616_v28, %v581_v26 }
 0x394   :  { %563 = vst.msk [vmem:[#allocation7] sm:$0xff] %vm562_vm1, %v559_v1 }
 0x395   :  { %842 = shalt.err (!%p839_p6)
}
 0x396   :  { %s843_s5 = scalar_lea.hbm %s1093_s9, 128 }
 0x397   :  { %p844_p7 = scmp.ne.s32.totalorder %s1093_s9, %s843_s5  ;;  %p847_p8 = scmp.lt.u32.totalorder %s843_s5, %s1093_s9 }
 0x399   :  { %p849_p9 = pnand %p847_p8, %p844_p7 }
 0x39b   :  { %852 = shalt.err (!%p849_p9)
}
 0x39c   :  { %573 = dma.vmem_to_hbm [thread:$0]  %s571_s6, 128, %s1093_s9, [#allocation4]  }
 0x39d   :  { %857 = dma.done.wait [#allocation4], 128  }
 0x39e   :  { %858 = vsyncadd [#allocation4], 4294967168 }
 0x39f   :  { %577 = vsyncpa [#allocation3], 1 }
 0x3a0   :  { %578 = vsyncpa [#allocation6], 1 }
 0x3a1   :  { %579 = vsyncpa [#allocation4], 1 }

</bundles_post_ra>
